<compile_context>
chip_gen: v7x
topology: tpu7x:2x2x1
jax: 0.10.0
libtpu: 0.0.40
codegen_flags: <defaults>
</compile_context>

<pallas_src>
import functools

import jax
import jax.numpy as jnp
import numpy as np
from jax import lax
from jax.experimental import pallas as pl
from jax.experimental.pallas import tpu as pltpu


# ----------------------------------------------------------------------------
# Fused Pallas kernel: (conv3x3 + BN(eval) + ReLU) x 2, one image per grid step
# ----------------------------------------------------------------------------
def _stacked_convs_kernel(x_ref, w1_ref, s1_ref, b1_ref, w2_ref, s2_ref, b2_ref,
                          o_ref, *, H, W, Cin, Cout):
    # x_ref:  (1, H, W*Cin)            bf16, lane-packed (W, Cin)
    # w1_ref: (3, W*Cin,  W*Cout)      bf16 banded (Toeplitz) conv-1 weights
    # w2_ref: (3, W*Cout, W*Cout)      bf16 banded conv-2 weights
    # s*_ref, b*_ref: (1, W*Cout)      f32 folded BN scale / shift (tiled over W)
    # o_ref:  (1, H, W*Cout)           f32, lane-dense output (W*Cout == 128)
    cdt = jnp.bfloat16

    def conv_bn_relu(x2d, c_in, w_ref, s_ref, b_ref):
        # x2d: (H, W*c_in).  Row pad (padding=1 in H) is a sublane concatenate;
        # the W-direction padding is already folded into the banded weight.
        zrow = jnp.zeros((1, W * c_in), x2d.dtype)
        xr = jnp.concatenate([zrow, x2d, zrow], axis=0)          # (H+2, W*c_in)
        # 3 fat MXU matmuls (one per ky) instead of 9 tiny K=Cin dots.
        acc = jnp.dot(xr[0:H], w1 := w_ref[0], preferred_element_type=jnp.float32)
        acc = acc + jnp.dot(xr[1:H + 1], w_ref[1], preferred_element_type=jnp.float32)
        acc = acc + jnp.dot(xr[2:H + 2], w_ref[2], preferred_element_type=jnp.float32)
        # f32 epilogue: folded BN (scale/shift include conv bias) + ReLU.
        return jnp.maximum(acc * s_ref[0] + b_ref[0], 0.0)

    x = x_ref[0]                                                  # (H, W*Cin) bf16
    y1 = conv_bn_relu(x, Cin, w1_ref, s1_ref, b1_ref)             # (H, W*Cout) f32
    y2 = conv_bn_relu(y1.astype(cdt), Cout, w2_ref, s2_ref, b2_ref)
    o_ref[0] = y2.astype(o_ref.dtype)


def _fused_pallas(x2d, w1b, s1, b1, w2b, s2, b2, H, W, Cin, Cout):
    N = x2d.shape[0]
    kernel = functools.partial(_stacked_convs_kernel, H=H, W=W, Cin=Cin, Cout=Cout)
    return pl.pallas_call(
        kernel,
        out_shape=jax.ShapeDtypeStruct((N, H, W * Cout), jnp.float32),
        grid_spec=pltpu.PrefetchScalarGridSpec(
            num_scalar_prefetch=0,
            grid=(N,),
            in_specs=[
                pl.BlockSpec((1, H, W * Cin), lambda n: (n, 0, 0)),
                # Weights / BN params: constant block index -> loaded once,
                # no re-DMA across grid steps.
                pl.BlockSpec((3, W * Cin, W * Cout), lambda n: (0, 0, 0)),
                pl.BlockSpec((1, W * Cout), lambda n: (0, 0)),
                pl.BlockSpec((1, W * Cout), lambda n: (0, 0)),
                pl.BlockSpec((3, W * Cout, W * Cout), lambda n: (0, 0, 0)),
                pl.BlockSpec((1, W * Cout), lambda n: (0, 0)),
                pl.BlockSpec((1, W * Cout), lambda n: (0, 0)),
            ],
            out_specs=pl.BlockSpec((1, H, W * Cout), lambda n: (n, 0, 0)),
        ),
        compiler_params=pltpu.CompilerParams(
            dimension_semantics=("parallel",)),
    )(x2d, w1b, s1, b1, w2b, s2, b2)


# ----------------------------------------------------------------------------
# Banded (Toeplitz) weight: 3x3 HWIO conv -> per-ky matmul on the packed row
# ----------------------------------------------------------------------------
def _banded_weight(w_hwio, W):
    """(3,3,Cin,Cout) -> (3, W*Cin, W*Cout) so that
       out[h, wo*Cout+co] = sum_ky  xrows[h+ky] @ band[ky]
    reproduces the padding=1 3x3 conv on a (W, Cin)-lane-packed row layout.
    Out-of-range taps (the W-direction zero padding) map to zero weights."""
    KH, KW, Cin, Cout = w_hwio.shape
    wi = np.arange(W)[None, :, None]           # input column
    wo = np.arange(W)[None, None, :]           # output column
    kx = np.arange(KW)[:, None, None]          # horizontal tap
    onehot = jnp.asarray((wi == wo + kx - 1).astype(np.float32))   # (KW, W, W)
    band = jnp.einsum('kpq,ykio->ypiqo', onehot, w_hwio)           # (KH,W,Cin,W,Cout)
    return band.reshape(KH, W * Cin, W * Cout)


# ----------------------------------------------------------------------------
# Parameter construction (deterministic, mimics the nn.Module __init__ shapes)
# ----------------------------------------------------------------------------
def _make_block_params(key, in_planes, out_planes):
    kw, kb, kg, kbeta, km, kv = jax.random.split(key, 6)
    w_oihw = jax.random.normal(kw, (out_planes, in_planes, 3, 3), jnp.float32) * 0.1
    conv_b = jax.random.normal(kb, (out_planes,), jnp.float32) * 0.1
    gamma = 1.0 + 0.1 * jax.random.normal(kg, (out_planes,), jnp.float32)
    beta = 0.1 * jax.random.normal(kbeta, (out_planes,), jnp.float32)
    r_mean = 0.1 * jax.random.normal(km, (out_planes,), jnp.float32)
    r_var = jnp.abs(jax.random.normal(kv, (out_planes,), jnp.float32)) + 0.5
    eps = 1e-5
    scale = gamma / jnp.sqrt(r_var + eps)                  # BN eval scale
    shift = (conv_b - r_mean) * scale + beta               # conv bias + BN shift
    w_hwio = jnp.transpose(w_oihw, (2, 3, 1, 0))           # (3, 3, Cin, Cout)
    return dict(w_oihw=w_oihw, conv_b=conv_b, gamma=gamma, beta=beta,
                r_mean=r_mean, r_var=r_var, eps=eps,
                w_hwio=w_hwio, scale=scale, shift=shift)


def _prep_kernel_params(p, W):
    Cout = p["scale"].shape[0]
    wband = _banded_weight(p["w_hwio"], W).astype(jnp.bfloat16)
    s = jnp.tile(p["scale"], W).reshape(1, W * Cout).astype(jnp.float32)
    b = jnp.tile(p["shift"], W).reshape(1, W * Cout).astype(jnp.float32)
    return wband, s, b


# ----------------------------------------------------------------------------
# Stacked2ConvsBlock forward (NCHW in / NCHW out, like the PyTorch module)
# ----------------------------------------------------------------------------
@jax.jit
def stacked2convs_forward(x_nchw, w1b, s1, b1, w2b, s2, b2):
    N, Cin, H, W = x_nchw.shape
    Cout = s1.shape[-1] // W
    # NCHW -> lane-packed (N, H, W*Cin), bf16 for the MXU (glue, single pass).
    x2d = jnp.transpose(x_nchw, (0, 2, 3, 1)).reshape(N, H, W * Cin)
    x2d = x2d.astype(jnp.bfloat16)
    out2d = _fused_pallas(x2d, w1b, s1, b1, w2b, s2, b2, H, W, Cin, Cout)
    return jnp.transpose(out2d.reshape(N, H, W, Cout), (0, 3, 1, 2))


# ----------------------------------------------------------------------------
# Pure-JAX reference (lax conv, f32) for correctness checking
# ----------------------------------------------------------------------------
def _ref_block(x_nchw, p):
    y = lax.conv_general_dilated(
        x_nchw, p["w_oihw"], window_strides=(1, 1), padding=((1, 1), (1, 1)),
        dimension_numbers=("NCHW", "OIHW", "NCHW"))
    y = y + p["conv_b"][None, :, None, None]
    y = (y - p["r_mean"][None, :, None, None]) / jnp.sqrt(
        p["r_var"][None, :, None, None] + p["eps"])
    y = y * p["gamma"][None, :, None, None] + p["beta"][None, :, None, None]
    return jnp.maximum(y, 0.0)


if __name__ == "__main__":
    key = jax.random.PRNGKey(0)
    k_x, k_p1, k_p2 = jax.random.split(key, 3)

    in_planes, out_planes = 4, 8
    N, H, W = 2, 16, 16

    x = jax.random.normal(k_x, (N, in_planes, H, W), jnp.float32)
    p1 = _make_block_params(k_p1, in_planes, out_planes)
    p2 = _make_block_params(k_p2, out_planes, out_planes)

    w1b, s1, b1 = _prep_kernel_params(p1, W)
    w2b, s2, b2 = _prep_kernel_params(p2, W)

    out = stacked2convs_forward(x, w1b, s1, b1, w2b, s2, b2)
    out = jax.block_until_ready(out)

    ref = _ref_block(_ref_block(x, p1), p2)
    ref = jax.block_until_ready(ref)

    assert out.shape == (N, out_planes, H, W), out.shape
    # bf16 MXU inputs (f32 accumulation) -> loosened tolerance vs f32 reference.
    np.testing.assert_allclose(np.asarray(out), np.asarray(ref),
                               rtol=5e-2, atol=5e-2)
    print("KERNEL_OK")
</pallas_src>

<mosaic_0001>
module attributes {stable_mosaic.version = 11 : i64} {
  func.func @_stacked_convs_kernel(%arg0: i32, %arg1: memref<1x16x64xbf16, #tpu.memory_space<vmem>>, %arg2: memref<3x64x128xbf16, #tpu.memory_space<vmem>>, %arg3: memref<1x128xf32, #tpu.memory_space<vmem>>, %arg4: memref<1x128xf32, #tpu.memory_space<vmem>>, %arg5: memref<3x128x128xbf16, #tpu.memory_space<vmem>>, %arg6: memref<1x128xf32, #tpu.memory_space<vmem>>, %arg7: memref<1x128xf32, #tpu.memory_space<vmem>>, %arg8: memref<1x16x128xf32, #tpu.memory_space<vmem>>) attributes {dimension_semantics = [#tpu.dimension_semantics<parallel>], iteration_bounds = array<i64: 2>, scalar_prefetch = 0 : i64, scratch_operands = 0 : i64, tpu.core_type = #tpu.core_type<tc>, window_params = [{transform_indices = @transform_0, window_bounds = array<i64: 1, 16, 64>}, {pipeline_mode = #tpu.pipeline_mode<synchronous>, transform_indices = @transform_1, window_bounds = array<i64: 3, 64, 128>}, {pipeline_mode = #tpu.pipeline_mode<synchronous>, transform_indices = @transform_2, window_bounds = array<i64: 1, 128>}, {pipeline_mode = #tpu.pipeline_mode<synchronous>, transform_indices = @transform_3, window_bounds = array<i64: 1, 128>}, {pipeline_mode = #tpu.pipeline_mode<synchronous>, transform_indices = @transform_4, window_bounds = array<i64: 3, 128, 128>}, {pipeline_mode = #tpu.pipeline_mode<synchronous>, transform_indices = @transform_5, window_bounds = array<i64: 1, 128>}, {pipeline_mode = #tpu.pipeline_mode<synchronous>, transform_indices = @transform_6, window_bounds = array<i64: 1, 128>}, {transform_indices = @transform_7, window_bounds = array<i64: 1, 16, 128>}]} {
    %c0 = arith.constant 0 : index
    %c0_0 = arith.constant 0 : index
    %c0_1 = arith.constant 0 : index
    %0 = vector.load %arg1[%c0, %c0_0, %c0_1] : memref<1x16x64xbf16, #tpu.memory_space<vmem>>, vector<1x16x64xbf16>
    %1 = vector.shape_cast %0 : vector<1x16x64xbf16> to vector<16x64xbf16>
    %cst = arith.constant 0.000000e+00 : bf16
    %2 = vector.broadcast %cst : bf16 to vector<1x64xbf16>
    %3 = tpu.concatenate %2, %1, %2 in 0 : vector<1x64xbf16>, vector<16x64xbf16>, vector<1x64xbf16> -> vector<18x64xbf16>
    %4 = vector.extract_strided_slice %3 {offsets = [0, 0], sizes = [16, 64], strides = [1, 1]} : vector<18x64xbf16> to vector<16x64xbf16>
    %c0_2 = arith.constant 0 : index
    %c0_3 = arith.constant 0 : index
    %c0_4 = arith.constant 0 : index
    %5 = vector.load %arg2[%c0_2, %c0_3, %c0_4] : memref<3x64x128xbf16, #tpu.memory_space<vmem>>, vector<1x64x128xbf16>
    %6 = vector.shape_cast %5 : vector<1x64x128xbf16> to vector<64x128xbf16>
    %cst_5 = arith.constant dense<0.000000e+00> : vector<16x128xf32>
    %7 = tpu.matmul %4, %6, %cst_5 {dimension_numbers = #tpu.dot_dimension_numbers<[1], [0], [0], [1], [0, 0, 1, 1], [], []>} : vector<16x64xbf16>, vector<64x128xbf16>, vector<16x128xf32> -> vector<16x128xf32>
    %8 = vector.extract_strided_slice %3 {offsets = [1, 0], sizes = [16, 64], strides = [1, 1]} : vector<18x64xbf16> to vector<16x64xbf16>
    %c1 = arith.constant 1 : index
    %c0_6 = arith.constant 0 : index
    %c0_7 = arith.constant 0 : index
    %9 = vector.load %arg2[%c1, %c0_6, %c0_7] : memref<3x64x128xbf16, #tpu.memory_space<vmem>>, vector<1x64x128xbf16>
    %10 = vector.shape_cast %9 : vector<1x64x128xbf16> to vector<64x128xbf16>
    %cst_8 = arith.constant dense<0.000000e+00> : vector<16x128xf32>
    %11 = tpu.matmul %8, %10, %cst_8 {dimension_numbers = #tpu.dot_dimension_numbers<[1], [0], [0], [1], [0, 0, 1, 1], [], []>} : vector<16x64xbf16>, vector<64x128xbf16>, vector<16x128xf32> -> vector<16x128xf32>
    %12 = arith.addf %7, %11 : vector<16x128xf32>
    %13 = vector.extract_strided_slice %3 {offsets = [2, 0], sizes = [16, 64], strides = [1, 1]} : vector<18x64xbf16> to vector<16x64xbf16>
    %c2 = arith.constant 2 : index
    %c0_9 = arith.constant 0 : index
    %c0_10 = arith.constant 0 : index
    %14 = vector.load %arg2[%c2, %c0_9, %c0_10] : memref<3x64x128xbf16, #tpu.memory_space<vmem>>, vector<1x64x128xbf16>
    %15 = vector.shape_cast %14 : vector<1x64x128xbf16> to vector<64x128xbf16>
    %cst_11 = arith.constant dense<0.000000e+00> : vector<16x128xf32>
    %16 = tpu.matmul %13, %15, %cst_11 {dimension_numbers = #tpu.dot_dimension_numbers<[1], [0], [0], [1], [0, 0, 1, 1], [], []>} : vector<16x64xbf16>, vector<64x128xbf16>, vector<16x128xf32> -> vector<16x128xf32>
    %17 = arith.addf %12, %16 : vector<16x128xf32>
    %c0_12 = arith.constant 0 : index
    %c0_13 = arith.constant 0 : index
    %18 = vector.load %arg3[%c0_12, %c0_13] : memref<1x128xf32, #tpu.memory_space<vmem>>, vector<1x128xf32>
    %19 = vector.shape_cast %18 : vector<1x128xf32> to vector<128xf32>
    %20 = vector.shape_cast %19 : vector<128xf32> to vector<1x128xf32>
    %21 = vector.broadcast %20 : vector<1x128xf32> to vector<16x128xf32>
    %22 = arith.mulf %17, %21 : vector<16x128xf32>
    %c0_14 = arith.constant 0 : index
    %c0_15 = arith.constant 0 : index
    %23 = vector.load %arg4[%c0_14, %c0_15] : memref<1x128xf32, #tpu.memory_space<vmem>>, vector<1x128xf32>
    %24 = vector.shape_cast %23 : vector<1x128xf32> to vector<128xf32>
    %25 = vector.shape_cast %24 : vector<128xf32> to vector<1x128xf32>
    %26 = vector.broadcast %25 : vector<1x128xf32> to vector<16x128xf32>
    %27 = arith.addf %22, %26 : vector<16x128xf32>
    %cst_16 = arith.constant 0.000000e+00 : f32
    %28 = vector.broadcast %cst_16 : f32 to vector<16x128xf32>
    %29 = arith.maximumf %27, %28 : vector<16x128xf32>
    %30 = arith.truncf %29 : vector<16x128xf32> to vector<16x128xbf16>
    %cst_17 = arith.constant 0.000000e+00 : bf16
    %31 = vector.broadcast %cst_17 : bf16 to vector<1x128xbf16>
    %32 = tpu.concatenate %31, %30, %31 in 0 : vector<1x128xbf16>, vector<16x128xbf16>, vector<1x128xbf16> -> vector<18x128xbf16>
    %33 = vector.extract_strided_slice %32 {offsets = [0, 0], sizes = [16, 128], strides = [1, 1]} : vector<18x128xbf16> to vector<16x128xbf16>
    %c0_18 = arith.constant 0 : index
    %c0_19 = arith.constant 0 : index
    %c0_20 = arith.constant 0 : index
    %34 = vector.load %arg5[%c0_18, %c0_19, %c0_20] : memref<3x128x128xbf16, #tpu.memory_space<vmem>>, vector<1x128x128xbf16>
    %35 = vector.shape_cast %34 : vector<1x128x128xbf16> to vector<128x128xbf16>
    %cst_21 = arith.constant dense<0.000000e+00> : vector<16x128xf32>
    %36 = tpu.matmul %33, %35, %cst_21 {dimension_numbers = #tpu.dot_dimension_numbers<[1], [0], [0], [1], [0, 0, 1, 1], [], []>} : vector<16x128xbf16>, vector<128x128xbf16>, vector<16x128xf32> -> vector<16x128xf32>
    %37 = vector.extract_strided_slice %32 {offsets = [1, 0], sizes = [16, 128], strides = [1, 1]} : vector<18x128xbf16> to vector<16x128xbf16>
    %c1_22 = arith.constant 1 : index
    %c0_23 = arith.constant 0 : index
    %c0_24 = arith.constant 0 : index
    %38 = vector.load %arg5[%c1_22, %c0_23, %c0_24] : memref<3x128x128xbf16, #tpu.memory_space<vmem>>, vector<1x128x128xbf16>
    %39 = vector.shape_cast %38 : vector<1x128x128xbf16> to vector<128x128xbf16>
    %cst_25 = arith.constant dense<0.000000e+00> : vector<16x128xf32>
    %40 = tpu.matmul %37, %39, %cst_25 {dimension_numbers = #tpu.dot_dimension_numbers<[1], [0], [0], [1], [0, 0, 1, 1], [], []>} : vector<16x128xbf16>, vector<128x128xbf16>, vector<16x128xf32> -> vector<16x128xf32>
    %41 = arith.addf %36, %40 : vector<16x128xf32>
    %42 = vector.extract_strided_slice %32 {offsets = [2, 0], sizes = [16, 128], strides = [1, 1]} : vector<18x128xbf16> to vector<16x128xbf16>
    %c2_26 = arith.constant 2 : index
    %c0_27 = arith.constant 0 : index
    %c0_28 = arith.constant 0 : index
    %43 = vector.load %arg5[%c2_26, %c0_27, %c0_28] : memref<3x128x128xbf16, #tpu.memory_space<vmem>>, vector<1x128x128xbf16>
    %44 = vector.shape_cast %43 : vector<1x128x128xbf16> to vector<128x128xbf16>
    %cst_29 = arith.constant dense<0.000000e+00> : vector<16x128xf32>
    %45 = tpu.matmul %42, %44, %cst_29 {dimension_numbers = #tpu.dot_dimension_numbers<[1], [0], [0], [1], [0, 0, 1, 1], [], []>} : vector<16x128xbf16>, vector<128x128xbf16>, vector<16x128xf32> -> vector<16x128xf32>
    %46 = arith.addf %41, %45 : vector<16x128xf32>
    %c0_30 = arith.constant 0 : index
    %c0_31 = arith.constant 0 : index
    %47 = vector.load %arg6[%c0_30, %c0_31] : memref<1x128xf32, #tpu.memory_space<vmem>>, vector<1x128xf32>
    %48 = vector.shape_cast %47 : vector<1x128xf32> to vector<128xf32>
    %49 = vector.shape_cast %48 : vector<128xf32> to vector<1x128xf32>
    %50 = vector.broadcast %49 : vector<1x128xf32> to vector<16x128xf32>
    %51 = arith.mulf %46, %50 : vector<16x128xf32>
    %c0_32 = arith.constant 0 : index
    %c0_33 = arith.constant 0 : index
    %52 = vector.load %arg7[%c0_32, %c0_33] : memref<1x128xf32, #tpu.memory_space<vmem>>, vector<1x128xf32>
    %53 = vector.shape_cast %52 : vector<1x128xf32> to vector<128xf32>
    %54 = vector.shape_cast %53 : vector<128xf32> to vector<1x128xf32>
    %55 = vector.broadcast %54 : vector<1x128xf32> to vector<16x128xf32>
    %56 = arith.addf %51, %55 : vector<16x128xf32>
    %cst_34 = arith.constant 0.000000e+00 : f32
    %57 = vector.broadcast %cst_34 : f32 to vector<16x128xf32>
    %58 = arith.maximumf %56, %57 : vector<16x128xf32>
    %c0_35 = arith.constant 0 : index
    %c0_36 = arith.constant 0 : index
    %c0_37 = arith.constant 0 : index
    %59 = vector.load %arg8[%c0_35, %c0_36, %c0_37] : memref<1x16x128xf32, #tpu.memory_space<vmem>>, vector<1x16x128xf32>
    %60 = vector.shape_cast %59 : vector<1x16x128xf32> to vector<16x128xf32>
    %61 = vector.shape_cast %58 : vector<16x128xf32> to vector<1x16x128xf32>
    tpu.vector_store %arg8[%c0_35, %c0_36, %c0_37], %61 {strides = array<i32>} : memref<1x16x128xf32, #tpu.memory_space<vmem>>, vector<1x16x128xf32>,
    return
  }
  func.func @transform_0(%arg0: i32) -> (i32, i32, i32) {
    %c0_i32 = arith.constant 0 : i32
    %c0_i32_0 = arith.constant 0 : i32
    %c0_i32_1 = arith.constant 0 : i32
    return %arg0, %c0_i32, %c0_i32_0 : i32, i32, i32
  }
  func.func @transform_1(%arg0: i32) -> (i32, i32, i32) {
    %c0_i32 = arith.constant 0 : i32
    %c0_i32_0 = arith.constant 0 : i32
    %c0_i32_1 = arith.constant 0 : i32
    %c0_i32_2 = arith.constant 0 : i32
    return %c0_i32, %c0_i32_0, %c0_i32_1 : i32, i32, i32
  }
  func.func @transform_2(%arg0: i32) -> (i32, i32) {
    %c0_i32 = arith.constant 0 : i32
    %c0_i32_0 = arith.constant 0 : i32
    %c0_i32_1 = arith.constant 0 : i32
    return %c0_i32, %c0_i32_0 : i32, i32
  }
  func.func @transform_3(%arg0: i32) -> (i32, i32) {
    %c0_i32 = arith.constant 0 : i32
    %c0_i32_0 = arith.constant 0 : i32
    %c0_i32_1 = arith.constant 0 : i32
    return %c0_i32, %c0_i32_0 : i32, i32
  }
  func.func @transform_4(%arg0: i32) -> (i32, i32, i32) {
    %c0_i32 = arith.constant 0 : i32
    %c0_i32_0 = arith.constant 0 : i32
    %c0_i32_1 = arith.constant 0 : i32
    %c0_i32_2 = arith.constant 0 : i32
    return %c0_i32, %c0_i32_0, %c0_i32_1 : i32, i32, i32
  }
  func.func @transform_5(%arg0: i32) -> (i32, i32) {
    %c0_i32 = arith.constant 0 : i32
    %c0_i32_0 = arith.constant 0 : i32
    %c0_i32_1 = arith.constant 0 : i32
    return %c0_i32, %c0_i32_0 : i32, i32
  }
  func.func @transform_6(%arg0: i32) -> (i32, i32) {
    %c0_i32 = arith.constant 0 : i32
    %c0_i32_0 = arith.constant 0 : i32
    %c0_i32_1 = arith.constant 0 : i32
    return %c0_i32, %c0_i32_0 : i32, i32
  }
  func.func @transform_7(%arg0: i32) -> (i32, i32, i32) {
    %c0_i32 = arith.constant 0 : i32
    %c0_i32_0 = arith.constant 0 : i32
    %c0_i32_1 = arith.constant 0 : i32
    return %arg0, %c0_i32, %c0_i32_0 : i32, i32, i32
  }
}

</mosaic_0001>

<bundles_post_ra>
// kernel: stacked2convs_forward.1
= control target key start
LH: loop header
LB: loop body
LE: loop exit
PB: predicated region body
PF: predicated region fallthrough
CT: control target
= control target key end

     0   :  { %s1353_s24 = smov 0   ;;  %s1561_s0 = inlined_call_operand.vmem [shape: bf16[2,16,64], index: 0, kind: input, shape index: {}]   ;;  %s1562_s1 = inlined_call_operand.vmem [shape: bf16[3,64,128], index: 1, kind: input, shape index: {}]   ;;  %s1563_s2 = inlined_call_operand.vmem [shape: f32[1,128], index: 2, kind: input, shape index: {}]   ;;  %s1564_s3 = inlined_call_operand.vmem [shape: f32[1,128], index: 3, kind: input, shape index: {}]   ;;  %s1565_s4 = inlined_call_operand.vmem [shape: bf16[3,128,128], index: 4, kind: input, shape index: {}]   ;;  %s1566_s5 = inlined_call_operand.vmem [shape: f32[1,128], index: 5, kind: input, shape index: {}]   ;;  %s1567_s6 = inlined_call_operand.vmem [shape: f32[1,128], index: 6, kind: input, shape index: {}]   ;;  %s1568_s7 = inlined_call_operand.vmem [shape: f32[2,16,128], index: 7, kind: output, shape index: {}]  }
   0x1 LB: > { %s999_s25 = sadd.s32 4294967295, %s1309_s24   ;;  %p1003_p0 = scmp.ge.s32.totalorder %s1309_s24, 1  ;;  %s1309_s24 = sphi %s1353_s24, %s17_s24  }
   0x2   : > { %p237_p1 = scmp.lt.s32.totalorder %s1309_s24, 3 }
   0x4   : > { %p238_p2 = pnand %p1003_p0, %p237_p1 }
   0x5   : > { %v1266_v0 = vld [vmem:[%s1562_s1 + $0x20] sm:$0xff] (!%p238_p2)   ;;  %v1311_v1 = vmov (!%p238_p2), 0.0   ;;  %v1267_v2 = vld [vmem:[%s1562_s1 + $0x28] sm:$0xff] (!%p238_p2)   ;;  %vm1312_vm0 = vmmov (!%p238_p2), 0   ;;  %p269_p3 = scmp.lt.s32.totalorder (!%p238_p2), %s999_s25, 1  ;;  %v1268_v3 = vld [vmem:[%s1562_s1 + $0x30] sm:$0xff] (!%p238_p2)  }
   0x6   : > { %241 = sbr.rel (%p238_p2) target bundleno = 547 (0x223), region = 48  ;;  %1146 = vmatprep.subr.bf16.mxu0 (!%p238_p2), %v1311_v1  ;;  %1202 = vmatprep.subr.bf16.mxu1 (!%p238_p2), %v1311_v1  ;;  %v1269_v5 = vld [vmem:[%s1562_s1 + $0x38] sm:$0xff] (!%p238_p2)   ;;  %vm296_vm1 = vcmask (!%p238_p2), 1040384   ;;  %vm297_vm2 = vsmask.f32 (!%p238_p2), 256  ;;  %v1279_v13 = vld [vmem:[%s1565_s4] sm:$0xff] (!%p238_p2)  }
   0x7   : > { %1147 = vmatpush3.bf16.msra.mxu0 (!%p238_p2), %v1266_v0  ;;  %1154 = vmatprep.mubr.msk.bf16.mxu0 (!%p238_p2), %vm1312_vm0, %v1311_v1  ;;  %vm1388_vm3 = vmand (!%p238_p2), %vm296_vm1, %vm297_vm2  ;;  %v1280_v17 = vld [vmem:[%s1565_s4 + $0x8] sm:$0xff] (!%p238_p2)   ;;  %vm318_vm4 = vsmask.f32 (!%p238_p2), 7424  ;;  %v1271_v20 = vld [vmem:[%s1562_s1] sm:$0xff] (!%p238_p2)   ;;  %vm355_vm5 = vcmask (!%p238_p2), 523264   ;;  %vm478_vm6 = vcmask (!%p238_p2), 1046528  }
   0x8   : > { %1148 = vmatprep.subr.bf16.mxu0 (!%p238_p2), %v1311_v1  ;;  %1218 = vmatprep.mubr.msk.bf16.mxu1 (!%p238_p2), %vm1312_vm0, %v1311_v1  ;;  %v1282_v21 = vld [vmem:[%s1565_s4 + $0x10] sm:$0xff] (!%p238_p2)   ;;  %v1272_v24 = vld [vmem:[%s1562_s1 + $0x8] sm:$0xff] (!%p238_p2)   ;;  %v1284_v25 = vld [vmem:[%s1565_s4 + $0x18] sm:$0xff] (!%p238_p2)  }
   0x9   : > { %1203 = vmatpush3.bf16.msra.mxu1 (!%p238_p2), %v1279_v13  ;;  %v1273_v26 = vld [vmem:[%s1562_s1 + $0x10] sm:$0xff] (!%p238_p2)   ;;  %v1274_v27 = vld [vmem:[%s1562_s1 + $0x18] sm:$0xff] (!%p238_p2)   ;;  %v1275_v28 = vld [vmem:[%s1562_s1 + $0x40] sm:$0xff] (!%p238_p2)  }
   0xa   : > { %1204 = vmatprep.subr.bf16.mxu1 (!%p238_p2), %v1311_v1  ;;  %v1276_v29 = vld [vmem:[%s1562_s1 + $0x48] sm:$0xff] (!%p238_p2)   ;;  %v1277_v30 = vld [vmem:[%s1562_s1 + $0x50] sm:$0xff] (!%p238_p2)   ;;  %v1278_v31 = vld [vmem:[%s1562_s1 + $0x58] sm:$0xff] (!%p238_p2)  }
   0xb   : > { %1149 = vmatpush3.bf16.msra.mxu0 (!%p238_p2), %v1267_v2  ;;  %v1281_v35 = vld [vmem:[%s1565_s4 + $0x40] sm:$0xff] (!%p238_p2)   ;;  %v1283_v36 = vld [vmem:[%s1565_s4 + $0x48] sm:$0xff] (!%p238_p2)   ;;  %v1285_v37 = vld [vmem:[%s1565_s4 + $0x50] sm:$0xff] (!%p238_p2)  }
   0xc   : > { %1150 = vmatprep.subr.bf16.mxu0 (!%p238_p2), %v1311_v1  ;;  %v1286_v38 = vld [vmem:[%s1565_s4 + $0x20] sm:$0xff] (!%p238_p2)   ;;  %v1287_v39 = vld [vmem:[%s1565_s4 + $0x58] sm:$0xff] (!%p238_p2)   ;;  %v1288_v40 = vld [vmem:[%s1565_s4 + $0x28] sm:$0xff] (!%p238_p2)  }
   0xd   : > { %s1572_s25 = smov (!%p269_p3, %s999_s25), 1  ;;  %1205 = vmatpush3.bf16.msra.mxu1 %v1280_v17  ;;  %v1289_v41 = vld [vmem:[%s1565_s4 + $0x60] sm:$0xff]   ;;  %v1290_v42 = vld [vmem:[%s1565_s4 + $0x30] sm:$0xff]   ;;  %v1291_v43 = vld [vmem:[%s1565_s4 + $0x68] sm:$0xff]  }
   0xe   : > { %s1102_s9 = sshll.u32 %s1572_s25, 3  ;;  %1206 = vmatprep.subr.bf16.mxu1 %v1311_v1  ;;  %v1292_v44 = vld [vmem:[%s1565_s4 + $0x38] sm:$0xff]   ;;  %v1293_v45 = vld [vmem:[%s1565_s4 + $0x70] sm:$0xff]   ;;  %v1040_v47 = vld [vmem:[%s1563_s2] ss:$0 sm:$0xff]  ;;  %s1103_s26 = sshll.u32 %s1572_s25, 4 }
   0xf   : > { %s273_s12 = scalar_lea.vmem %s1561_s0, %s1102_s9  ;;  %1151 = vmatpush3.bf16.msra.mxu0 %v1268_v3  ;;  %v1295_v46 = vld [vmem:[%s1565_s4 + $0x78] sm:$0xff]   ;;  %v1041_v49 = vld [vmem:[%s1564_s3] ss:$0 sm:$0xff]  ;;  %v1297_v9 = vld [vmem:[%s1565_s4 + $0x90] sm:$0xff]   ;;  %s278_s29 = scalar_lea.vmem %s1568_s7, %s1103_s26 }
  0x10   : > { %v1270_v4 = vld [vmem:[%s273_s12] sm:$0xff]   ;;  %1152 = vmatprep.subr.bf16.mxu0 %v1311_v1  ;;  %v1298_v13 = vld [vmem:[%s1565_s4 + $0x98] sm:$0xff]  }
  0x11   : > { %v288_v6 = vshrl.u32 %v1270_v4, 16  ;;  %v291_v7 = vshll.u32 %v1270_v4, 16  ;;  %1207 = vmatpush3.bf16.msra.mxu1 %v1282_v21  ;;  %v1294_v0 = vld [vmem:[%s1565_s4 + $0x80] sm:$0xff]   ;;  %v1302_v17 = vld [vmem:[%s1565_s4 + $0xb8] sm:$0xff]  }
  0x12   : > { %1208 = vmatprep.subr.bf16.mxu1 %v1311_v1 }
  0x13   : > { %v290_v8 = vrot.slane %v288_v6, 7  ;;  %1153 = vmatpush3.bf16.msra.mxu0 %v1269_v5  ;;  %v1296_v6 = vld [vmem:[%s1565_s4 + $0x88] sm:$0xff]  }
  0x14   : > { %1158 = vmatprep.subr.bf16.mxu0 %v1311_v1 }
  0x15   : > { %v293_v10 = vor.u32 %v291_v7, %v290_v8  ;;  %v300_v11 = vsel %vm1388_vm3, %v290_v8, 0  ;;  %1209 = vmatpush3.bf16.msra.mxu1 %v1284_v25 }
  0x16   : > { %v327_v12 = vshll.u32 %v300_v11, 16  ;;  %1210 = vmatprep.subr.bf16.mxu1 %v1311_v1  ;;  %v480_v33 = vrot.slane %v300_v11, 1 }
  0x17   : > { %v299_v14 = vsel %vm1388_vm3, 0, %v293_v10 }
  0x18   : > { %v320_v15 = vshrl.u32 %v299_v14, 16  ;;  %v322_v16 = vshll.u32 %v299_v14, 16  ;;  %v329_v19 = vrot.slane %v327_v12, 1  ;;  %v479_v32 = vrot.slane %v299_v14, 1 }
  0x19   : > { %1211 = vmatpush3.bf16.msra.mxu1 %v1286_v38 }
  0x1a   : > { %v324_v18 = vrot.slane %v322_v16, 1  ;;  %v481_v34 = vsel %vm478_vm6, %v479_v32, %v480_v33  ;;  %1212 = vmatprep.subr.bf16.mxu1 %v1311_v1  ;;  %v1301_v16 = vld [vmem:[%s1565_s4 + $0xb0] sm:$0xff]  }
  0x1c   : > { %v325_v22 = vor.u32 %v324_v18, %v320_v15  ;;  %v1300_v15 = vld [vmem:[%s1565_s4 + $0xa8] sm:$0xff]  }
  0x1d   : > { %1213 = vmatpush3.bf16.msra.mxu1 %v1288_v40 }
  0x1e   : > { %v330_v23 = vsel %vm318_vm4, %v325_v22, %v329_v19  ;;  %1214 = vmatprep.subr.bf16.mxu1 %v1311_v1 }
  0x1f   : > { %1155 = vmatmul.mubr.msk.bf16.vlgmr.msra.gmra.mrb[0].mxu0 %vm355_vm5, %v330_v23 }
  0x20   : > { %1159 = vmatpush3.bf16.msra.mxu0 %v1271_v20  ;;  %1166 = vmatprep.mubr.msk.bf16.mxu0 %vm1312_vm0, %v1311_v1 }
  0x21   : > { %1160 = vmatprep.subr.bf16.mxu0 %v1311_v1  ;;  %1215 = vmatpush3.bf16.msra.mxu1 %v1290_v42 }
  0x22   : > { %1216 = vmatprep.subr.bf16.mxu1 %v1311_v1 }
  0x24   : > { %1161 = vmatpush3.bf16.msra.mxu0 %v1272_v24 }
  0x25   : > { %1162 = vmatprep.subr.bf16.mxu0 %v1311_v1  ;;  %1217 = vmatpush3.bf16.msra.mxu1 %v1292_v44 }
  0x26   : > { %1222 = vmatprep.subr.bf16.mxu1 %v1311_v1 }
  0x28   : > { %1163 = vmatpush3.bf16.msra.mxu0 %v1273_v26  ;;  %v1098_v26 = vld [vmem:[%s1566_s5] ss:$0 sm:$0xff] }
  0x29   : > { %1164 = vmatprep.subr.bf16.mxu0 %v1311_v1 }
  0x2c   : > { %1165 = vmatpush3.bf16.msra.mxu0 %v1274_v27 }
  0x2d   : > { %1170 = vmatprep.subr.bf16.mxu0 %v1311_v1 }
  0x2f   : > { %1167 = vmatmul.mubr.msk.bf16.vlgmr.msra.gmra.mrb[0].mxu0 %vm355_vm5, %v299_v14  ;;  %v1299_v14 = vld [vmem:[%s1565_s4 + $0xa0] sm:$0xff]  }
  0x30   : > { %1171 = vmatpush3.bf16.msra.mxu0 %v1275_v28  ;;  %1178 = vmatprep.mubr.msk.bf16.mxu0 %vm1312_vm0, %v1311_v1 }
  0x31   : > { %1172 = vmatprep.subr.bf16.mxu0 %v1311_v1 }
  0x34   : > { %1173 = vmatpush3.bf16.msra.mxu0 %v1276_v29 }
  0x35   : > { %1174 = vmatprep.subr.bf16.mxu0 %v1311_v1 }
  0x38   : > { %1175 = vmatpush3.bf16.msra.mxu0 %v1277_v30 }
  0x39   : > { %1176 = vmatprep.subr.bf16.mxu0 %v1311_v1 }
  0x3c   : > { %1177 = vmatpush3.bf16.msra.mxu0 %v1278_v31 }
  0x3d   : > { %1182 = vmatprep.subr.bf16.mxu0 %v1311_v1 }
  0x3f   : > { %1179 = vmatmul.mubr.msk.bf16.vlgmr.msra.gmra.mrb[0].mxu0 %vm355_vm5, %v481_v34 }
  0x40   : > { %1183 = vmatpush3.bf16.msra.mxu0 %v1281_v35  ;;  %1198 = vmatprep.mubr.msk.bf16.mxu0 %vm1312_vm0, %v1311_v1 }
  0x41   : > { %1184 = vmatprep.subr.bf16.mxu0 %v1311_v1 }
  0x44   : > { %1185 = vmatpush3.bf16.msra.mxu0 %v1283_v36 }
  0x45   : > { %1186 = vmatprep.subr.bf16.mxu0 %v1311_v1 }
  0x48   : > { %1187 = vmatpush3.bf16.msra.mxu0 %v1285_v37 }
  0x49   : > { %1188 = vmatprep.subr.bf16.mxu0 %v1311_v1 }
  0x4c   : > { %1189 = vmatpush3.bf16.msra.mxu0 %v1287_v39 }
  0x4d   : > { %1190 = vmatprep.subr.bf16.mxu0 %v1311_v1 }
  0x50   : > { %1191 = vmatpush3.bf16.msra.mxu0 %v1289_v41 }
  0x51   : > { %1192 = vmatprep.subr.bf16.mxu0 %v1311_v1 }
  0x54   : > { %1193 = vmatpush3.bf16.msra.mxu0 %v1291_v43 }
  0x55   : > { %1194 = vmatprep.subr.bf16.mxu0 %v1311_v1 }
  0x58   : > { %1195 = vmatpush3.bf16.msra.mxu0 %v1293_v45 }
  0x59   : > { %1196 = vmatprep.subr.bf16.mxu0 %v1311_v1 }
  0x5c   : > { %1197 = vmatpush3.bf16.msra.mxu0 %v1295_v46 }
 0x112   : > { %v543_v48 = vpop.f32.mrb[0].mxu0 }
 0x113   : > { %v559_v50 = vmul.f32 %v1040_v47, %v543_v48  ;;  %v1180_v51 = vpop.f32.mrb[1].mxu0 }
 0x114   : > { %v546_v52 = vpop.f32.mrb[2].mxu0 }
 0x115   : > { %v568_v53 = vadd.f32 %v1041_v49, %v559_v50  ;;  %v560_v54 = vmul.f32 %v1040_v47, %v546_v52  ;;  %v1181_v55 = vpop.f32.mrb[3].mxu0 }
 0x117   : > { %v569_v56 = vadd.f32 %v1041_v49, %v560_v54  ;;  %v570_v57 = vmax.f32 %v568_v53, 0.0 }
 0x119   : > { %v571_v58 = vmax.f32 %v569_v56, 0.0 }
 0x11b   : > { %v572_v59 = vpack.c.bf16 %v571_v58, %v570_v57 }
 0x11d   : > { %v574_v60 = vshrl.u32 %v572_v59, 16  ;;  %v577_v61 = vshll.u32 %v572_v59, 16 }
 0x11f   : > { %v576_v62 = vrot.slane %v574_v60, 7 }
 0x121   : > { %v579_v63 = vor.u32 %v577_v61, %v576_v62  ;;  %v583_v2 = vsel %vm1388_vm3, %v576_v62, 0 }
 0x122   : > { %v625_v5 = vshll.u32 %v583_v2, 16  ;;  %v828_v19 = vrot.slane %v583_v2, 1 }
 0x123   : > { %v582_v3 = vsel %vm1388_vm3, 0, %v579_v63 }
 0x124   : > { %v620_v4 = vshll.u32 %v582_v3, 16  ;;  %1219 = vmatmul.mubr.bf16.vlgmr.msra.gmra.mrb[0].mxu1 %v582_v3  ;;  %v618_v7 = vshrl.u32 %v582_v3, 16  ;;  %v627_v11 = vrot.slane %v625_v5, 1  ;;  %v827_v18 = vrot.slane %v582_v3, 1 }
 0x125   : > { %1223 = vmatpush3.bf16.msra.mxu1 %v1294_v0  ;;  %1238 = vmatprep.mubr.msk.bf16.mxu1 %vm1312_vm0, %v1311_v1 }
 0x126   : > { %v622_v8 = vrot.slane %v620_v4, 1  ;;  %1224 = vmatprep.subr.bf16.mxu1 %v1311_v1  ;;  %v829_v20 = vsel %vm478_vm6, %v827_v18, %v828_v19 }
 0x128   : > { %v623_v10 = vor.u32 %v622_v8, %v618_v7 }
 0x129   : > { %1225 = vmatpush3.bf16.msra.mxu1 %v1296_v6 }
 0x12a   : > { %v628_v12 = vsel %vm318_vm4, %v623_v10, %v627_v11  ;;  %1226 = vmatprep.subr.bf16.mxu1 %v1311_v1 }
 0x12b   : > { %1199 = vmatmul.mubr.bf16.vlgmr.msra.gmra.mrb[4].mxu0 %v628_v12 }
 0x12d   : > { %1227 = vmatpush3.bf16.msra.mxu1 %v1297_v9 }
 0x12e   : > { %1228 = vmatprep.subr.bf16.mxu1 %v1311_v1 }
 0x131   : > { %1229 = vmatpush3.bf16.msra.mxu1 %v1298_v13 }
 0x132   : > { %1230 = vmatprep.subr.bf16.mxu1 %v1311_v1 }
 0x135   : > { %1231 = vmatpush3.bf16.msra.mxu1 %v1299_v14 }
 0x136   : > { %1232 = vmatprep.subr.bf16.mxu1 %v1311_v1 }
 0x139   : > { %1233 = vmatpush3.bf16.msra.mxu1 %v1300_v15 }
 0x13a   : > { %1234 = vmatprep.subr.bf16.mxu1 %v1311_v1 }
 0x13d   : > { %1235 = vmatpush3.bf16.msra.mxu1 %v1301_v16 }
 0x13e   : > { %1236 = vmatprep.subr.bf16.mxu1 %v1311_v1  ;;  %v1099_v1 = vld [vmem:[%s1567_s6] ss:$0 sm:$0xff] }
 0x141   : > { %1237 = vmatpush3.bf16.msra.mxu1 %v1302_v17 }
 0x144   : > { %1239 = vmatmul.mubr.bf16.vlgmr.msra.gmra.mrb[0].mxu1 %v829_v20 }
 0x1fe   : > { %v712_v21 = vpop.f32.mrb[4].mxu0 }
 0x1ff   : > { %v1200_v22 = vpop.f32.mrb[5].mxu0 }
 0x200   : > { %v715_v23 = vpop.f32.mrb[6].mxu0 }
 0x201   : > { %v1201_v24 = vpop.f32.mrb[7].mxu0 }
 0x217   : > { %v913_v25 = vpop.f32.mrb[0].mxu1 }
 0x218   : > { %v1242_v27 = vadd.f32 %v913_v25, %v712_v21  ;;  %v1240_v28 = vpop.f32.mrb[1].mxu1 }
 0x219   : > { %v916_v29 = vpop.f32.mrb[2].mxu1 }
 0x21a   : > { %v929_v30 = vmul.f32 %v1242_v27, %v1098_v26  ;;  %v1243_v31 = vadd.f32 %v916_v29, %v715_v23  ;;  %v1241_v32 = vpop.f32.mrb[3].mxu1 }
 0x21c   : > { %v938_v33 = vadd.f32 %v1099_v1, %v929_v30  ;;  %v930_v34 = vmul.f32 %v1243_v31, %v1098_v26 }
 0x21e   : > { %v940_v35 = vmax.f32 %v938_v33, 0.0  ;;  %v939_v36 = vadd.f32 %v1099_v1, %v930_v34 }
 0x220   : > { %942 = vst [vmem:[%s278_s29] sm:$0xff] %v940_v35  ;;  %v941_v37 = vmax.f32 %v939_v36, 0.0 }
 0x222   : > { %943 = vst [vmem:[%s278_s29 + $0x8] sm:$0xff] %v941_v37 }
 0x223 PF: > { %s17_s24 = sadd.s32 1, %s1309_s24  }
 0x224   : > { %p14_p4 = scmp.ge.s32.totalorder %s17_s24, 4  }
 0x226   :  { %16 = sbr.rel (!%p14_p4) target bundleno = 1 (0x1), region = 82 }

</bundles_post_ra>
